<compile_context>
chip_gen: v6e
topology: v6e:2x2x1
jax: 0.10.0
libtpu: 0.0.40
codegen_flags: <defaults>
</compile_context>

<pallas_src>
import math

import jax
import jax.numpy as jnp
from jax import lax
from jax.experimental import pallas as pl
from jax.experimental.pallas import tpu as pltpu

_LANES = 128
_SUBLANES = 8


def _make_kernel(rows_tile, n_valid, needs_mask):
    n8 = rows_tile // _SUBLANES
    tile_elems = rows_tile * _LANES

    def _fold(v):
        # (rows_tile, 128) -> (8, 128) partial sums: pure VALU vreg adds, no XLU.
        return jnp.sum(v.reshape(n8, _SUBLANES, _LANES), axis=0)

    def kernel(pred_ref, true_ref, out_ref, inter_acc, union_acc, bce_acc):
        j = pl.program_id(1)
        last_j = pl.num_programs(1) - 1

        @pl.when(j == 0)
        def _():
            inter_acc[...] = jnp.zeros_like(inter_acc)
            union_acc[...] = jnp.zeros_like(union_acc)
            bce_acc[...] = jnp.zeros_like(bce_acc)

        x = pred_ref[0].astype(jnp.float32)   # (rows_tile, 128) logits
        y = true_ref[0].astype(jnp.float32)   # (rows_tile, 128) targets

        def accum(xv, yv, valid):
            if valid is not None:
                xv = jnp.where(valid, xv, 0.0)
                yv = jnp.where(valid, yv, 0.0)
            inter_acc[...] += _fold(xv * yv)
            union_acc[...] += _fold(xv + yv)
            # BCE-with-logits element WITHOUT the -x*y term; that term equals the
            # intersection and is subtracted in the wrapper.
            b = jnp.maximum(xv, 0.0) + jnp.log1p(jnp.exp(-jnp.abs(xv)))
            if valid is not None:
                b = jnp.where(valid, b, 0.0)
            bce_acc[...] += _fold(b)

        if needs_mask:
            # Ragged tail only exists on the last reduction step; keep the common
            # path mask-free.
            @pl.when(j != last_j)
            def _():
                accum(x, y, None)

            @pl.when(j == last_j)
            def _():
                rid = lax.broadcasted_iota(jnp.int32, (rows_tile, _LANES), 0)
                cid = lax.broadcasted_iota(jnp.int32, (rows_tile, _LANES), 1)
                elem = j * tile_elems + rid * _LANES + cid
                accum(x, y, elem < n_valid)
        else:
            accum(x, y, None)

        @pl.when(j == last_j)
        def _():
            out_ref[0, 0, :, :] = inter_acc[...]
            out_ref[0, 1, :, :] = union_acc[...]
            out_ref[0, 2, :, :] = bce_acc[...]

    return kernel


def segmentation_loss(y_pred, y_true, smooth=1.0, max_rows_per_tile=4096):
    """y_pred, y_true: (B, ...) float arrays (logits / targets). Returns loss (B,)."""
    B = y_pred.shape[0]
    N = math.prod(y_pred.shape[1:])

    # Rows of 128 lanes per batch, rounded up to a multiple of 8 sublanes so every
    # block is (8,128)-aligned.  Pad is at most 1023 elements per batch row and is
    # skipped entirely for 1024-aligned shapes; padded / OOB tail elements are
    # masked inside the kernel (no analytic correction, no over-padding to the
    # row-tile size).
    R = pl.cdiv(N, _LANES)
    R8 = pl.cdiv(R, _SUBLANES) * _SUBLANES
    pad = R8 * _LANES - N

    rows_tile = min(max_rows_per_tile, R8)          # multiple of 8 by construction
    num_j = pl.cdiv(R8, rows_tile)
    needs_mask = (num_j * rows_tile * _LANES) != N

    pred2d = y_pred.reshape(B, N)
    true2d = y_true.reshape(B, N)
    if pad:
        pred2d = jnp.pad(pred2d, ((0, 0), (0, pad)))
        true2d = jnp.pad(true2d, ((0, 0), (0, pad)))
    # Keep native dtype (bf16 stays bf16 -> half the HBM bytes); cast in-kernel.
    pred3d = pred2d.reshape(B, R8, _LANES)
    true3d = true2d.reshape(B, R8, _LANES)

    kernel = _make_kernel(rows_tile, N, needs_mask)

    # TODO(synk): for v7x with B==1 (or odd B), add a second "parallel" grid axis
    # that splits the reduction across the 2 TensorCores and combine per-core
    # partials in the wrapper.
    parts = pl.pallas_call(
        kernel,
        out_shape=jax.ShapeDtypeStruct((B, 3, _SUBLANES, _LANES), jnp.float32),
        grid_spec=pltpu.PrefetchScalarGridSpec(
            num_scalar_prefetch=0,
            grid=(B, num_j),
            in_specs=[
                pl.BlockSpec((1, rows_tile, _LANES), lambda b, j: (b, j, 0)),
                pl.BlockSpec((1, rows_tile, _LANES), lambda b, j: (b, j, 0)),
            ],
            out_specs=pl.BlockSpec((1, 3, _SUBLANES, _LANES),
                                   lambda b, j: (b, 0, 0, 0)),
            scratch_shapes=[
                pltpu.VMEM((_SUBLANES, _LANES), jnp.float32),
                pltpu.VMEM((_SUBLANES, _LANES), jnp.float32),
                pltpu.VMEM((_SUBLANES, _LANES), jnp.float32),
            ],
        ),
        compiler_params=pltpu.CompilerParams(
            dimension_semantics=("parallel", "arbitrary"),
        ),
    )(pred3d, true3d)

    # Tiny finishing reduce over the (8,128) partials.
    sums = jnp.sum(parts, axis=(2, 3))              # (B, 3)
    inter = sums[:, 0]
    union = sums[:, 1]
    bce_partial = sums[:, 2]

    # BCEWithLogits mean over ALL elements; the per-element -x*y term is exactly
    # the (already computed) intersection.
    bce_total = jnp.sum(bce_partial) - jnp.sum(inter)
    bce_mean = bce_total / jnp.float32(B * N)

    dice_score = (2.0 * inter + smooth) / (union + smooth)
    dice_loss = 1.0 - dice_score
    return dice_loss + 1.0 * bce_mean               # broadcast scalar BCE onto (B,)


def _reference(y_pred, y_true, smooth=1.0):
    B = y_pred.shape[0]
    iflat = y_pred.reshape(B, -1).astype(jnp.float32)
    tflat = y_true.reshape(B, -1).astype(jnp.float32)
    inter = jnp.sum(iflat * tflat, axis=1)
    union = jnp.sum(iflat + tflat, axis=1)
    dice = (2.0 * inter + smooth) / (union + smooth)
    x, y = iflat, tflat
    bce = jnp.mean(jnp.maximum(x, 0.0) - x * y + jnp.log1p(jnp.exp(-jnp.abs(x))))
    return (1.0 - dice) + bce


if __name__ == "__main__":
    key = jax.random.PRNGKey(0)
    k1, k2, k3, k4, k5, k6 = jax.random.split(key, 6)

    # Shape implied by the module: (B, C, H, W) segmentation logits / targets.
    B, C, H, W = 2, 4, 16, 16
    y_pred = jax.random.normal(k1, (B, C, H, W), dtype=jnp.float32)           # logits
    y_true = (jax.random.uniform(k2, (B, C, H, W)) > 0.5).astype(jnp.float32) # targets

    out = jax.block_until_ready(segmentation_loss(y_pred, y_true, smooth=1.0))
    ref = _reference(y_pred, y_true, smooth=1.0)
    assert out.shape == (B,)
    assert jnp.allclose(out, ref, atol=1e-4, rtol=1e-4), (out, ref)

    # Non-1024-aligned shape -> exercises the in-kernel ragged-tail masking path.
    yp2 = jax.random.normal(k3, (2, 3, 17, 19), dtype=jnp.float32)
    yt2 = jax.random.uniform(k4, (2, 3, 17, 19), dtype=jnp.float32)
    out2 = jax.block_until_ready(segmentation_loss(yp2, yt2))
    ref2 = _reference(yp2, yt2)
    assert jnp.allclose(out2, ref2, atol=1e-4, rtol=1e-4), (out2, ref2)

    # Multi-step reduction with a partially out-of-bounds last row tile.
    yp3 = jax.random.normal(k5, (3, 3, 64, 70), dtype=jnp.float32)
    yt3 = jax.random.uniform(k6, (3, 3, 64, 70), dtype=jnp.float32)
    out3 = jax.block_until_ready(segmentation_loss(yp3, yt3, max_rows_per_tile=32))
    ref3 = _reference(yp3, yt3)
    assert jnp.allclose(out3, ref3, atol=1e-3, rtol=1e-4), (out3, ref3)

    print("KERNEL_OK")
</pallas_src>

<mosaic_0001>
module attributes {stable_mosaic.version = 11 : i64} {
  func.func @kernel(%arg0: i32, %arg1: i32, %arg2: memref<1x8x128xf32, #tpu.memory_space<vmem>>, %arg3: memref<1x8x128xf32, #tpu.memory_space<vmem>>, %arg4: memref<1x3x8x128xf32, #tpu.memory_space<vmem>>, %arg5: memref<8x128xf32, #tpu.memory_space<vmem>>, %arg6: memref<8x128xf32, #tpu.memory_space<vmem>>, %arg7: memref<8x128xf32, #tpu.memory_space<vmem>>) attributes {dimension_semantics = [#tpu.dimension_semantics<parallel>, #tpu.dimension_semantics<arbitrary>], iteration_bounds = array<i64: 2, 1>, scalar_prefetch = 0 : i64, scratch_operands = 3 : i64, tpu.core_type = #tpu.core_type<tc>, window_params = [{transform_indices = @transform_0, window_bounds = array<i64: 1, 8, 128>}, {transform_indices = @transform_1, window_bounds = array<i64: 1, 8, 128>}, {transform_indices = @transform_2, window_bounds = array<i64: 1, 3, 8, 128>}]} {
    %c0_i32 = arith.constant 0 : i32
    %0 = arith.cmpi eq, %arg1, %c0_i32 : i32
    %1 = arith.extui %0 : i1 to i32
    %c0_i32_0 = arith.constant 0 : i32
    %2 = arith.cmpi ne, %1, %c0_i32_0 : i32
    scf.if %2 {
      %cst_24 = arith.constant 0.000000e+00 : f32
      %35 = vector.broadcast %cst_24 : f32 to vector<8x128xf32>
      %c0_25 = arith.constant 0 : index
      %c0_26 = arith.constant 0 : index
      %36 = vector.load %arg5[%c0_25, %c0_26] : memref<8x128xf32, #tpu.memory_space<vmem>>, vector<8x128xf32>
      tpu.vector_store %arg5[%c0_25, %c0_26], %35 {strides = array<i32>} : memref<8x128xf32, #tpu.memory_space<vmem>>, vector<8x128xf32>,
      %cst_27 = arith.constant 0.000000e+00 : f32
      %37 = vector.broadcast %cst_27 : f32 to vector<8x128xf32>
      %c0_28 = arith.constant 0 : index
      %c0_29 = arith.constant 0 : index
      %38 = vector.load %arg6[%c0_28, %c0_29] : memref<8x128xf32, #tpu.memory_space<vmem>>, vector<8x128xf32>
      tpu.vector_store %arg6[%c0_28, %c0_29], %37 {strides = array<i32>} : memref<8x128xf32, #tpu.memory_space<vmem>>, vector<8x128xf32>,
      %cst_30 = arith.constant 0.000000e+00 : f32
      %39 = vector.broadcast %cst_30 : f32 to vector<8x128xf32>
      %c0_31 = arith.constant 0 : index
      %c0_32 = arith.constant 0 : index
      %40 = vector.load %arg7[%c0_31, %c0_32] : memref<8x128xf32, #tpu.memory_space<vmem>>, vector<8x128xf32>
      tpu.vector_store %arg7[%c0_31, %c0_32], %39 {strides = array<i32>} : memref<8x128xf32, #tpu.memory_space<vmem>>, vector<8x128xf32>,
    } else {
    }
    %c0 = arith.constant 0 : index
    %c0_1 = arith.constant 0 : index
    %c0_2 = arith.constant 0 : index
    %3 = vector.load %arg2[%c0, %c0_1, %c0_2] : memref<1x8x128xf32, #tpu.memory_space<vmem>>, vector<1x8x128xf32>
    %4 = vector.shape_cast %3 : vector<1x8x128xf32> to vector<8x128xf32>
    %c0_3 = arith.constant 0 : index
    %c0_4 = arith.constant 0 : index
    %c0_5 = arith.constant 0 : index
    %5 = vector.load %arg3[%c0_3, %c0_4, %c0_5] : memref<1x8x128xf32, #tpu.memory_space<vmem>>, vector<1x8x128xf32>
    %6 = vector.shape_cast %5 : vector<1x8x128xf32> to vector<8x128xf32>
    %c0_6 = arith.constant 0 : index
    %c0_7 = arith.constant 0 : index
    %7 = vector.load %arg5[%c0_6, %c0_7] : memref<8x128xf32, #tpu.memory_space<vmem>>, vector<8x128xf32>
    %8 = arith.mulf %4, %6 : vector<8x128xf32>
    %9 = vector.shape_cast %8 : vector<8x128xf32> to vector<1x8x128xf32>
    %cst = arith.constant dense<0.000000e+00> : vector<8x128xf32>
    %10 = vector.multi_reduction <add>, %9, %cst [0] : vector<1x8x128xf32> to vector<8x128xf32>
    %11 = arith.addf %7, %10 : vector<8x128xf32>
    %c0_8 = arith.constant 0 : index
    %c0_9 = arith.constant 0 : index
    %12 = vector.load %arg5[%c0_8, %c0_9] : memref<8x128xf32, #tpu.memory_space<vmem>>, vector<8x128xf32>
    tpu.vector_store %arg5[%c0_8, %c0_9], %11 {strides = array<i32>} : memref<8x128xf32, #tpu.memory_space<vmem>>, vector<8x128xf32>,
    %c0_10 = arith.constant 0 : index
    %c0_11 = arith.constant 0 : index
    %13 = vector.load %arg6[%c0_10, %c0_11] : memref<8x128xf32, #tpu.memory_space<vmem>>, vector<8x128xf32>
    %14 = arith.addf %4, %6 : vector<8x128xf32>
    %15 = vector.shape_cast %14 : vector<8x128xf32> to vector<1x8x128xf32>
    %cst_12 = arith.constant dense<0.000000e+00> : vector<8x128xf32>
    %16 = vector.multi_reduction <add>, %15, %cst_12 [0] : vector<1x8x128xf32> to vector<8x128xf32>
    %17 = arith.addf %13, %16 : vector<8x128xf32>
    %c0_13 = arith.constant 0 : index
    %c0_14 = arith.constant 0 : index
    %18 = vector.load %arg6[%c0_13, %c0_14] : memref<8x128xf32, #tpu.memory_space<vmem>>, vector<8x128xf32>
    tpu.vector_store %arg6[%c0_13, %c0_14], %17 {strides = array<i32>} : memref<8x128xf32, #tpu.memory_space<vmem>>, vector<8x128xf32>,
    %cst_15 = arith.constant 0.000000e+00 : f32
    %19 = vector.broadcast %cst_15 : f32 to vector<8x128xf32>
    %20 = arith.maximumf %4, %19 : vector<8x128xf32>
    %21 = math.absf %4 : vector<8x128xf32>
    %cst_16 = arith.constant 0.000000e+00 : f32
    %22 = vector.broadcast %cst_16 : f32 to vector<8x128xf32>
    %23 = arith.subf %22, %21 : vector<8x128xf32>
    %24 = math.exp %23 : vector<8x128xf32>
    %25 = math.log1p %24 : vector<8x128xf32>
    %26 = arith.addf %20, %25 : vector<8x128xf32>
    %c0_17 = arith.constant 0 : index
    %c0_18 = arith.constant 0 : index
    %27 = vector.load %arg7[%c0_17, %c0_18] : memref<8x128xf32, #tpu.memory_space<vmem>>, vector<8x128xf32>
    %28 = vector.shape_cast %26 : vector<8x128xf32> to vector<1x8x128xf32>
    %cst_19 = arith.constant dense<0.000000e+00> : vector<8x128xf32>
    %29 = vector.multi_reduction <add>, %28, %cst_19 [0] : vector<1x8x128xf32> to vector<8x128xf32>
    %30 = arith.addf %27, %29 : vector<8x128xf32>
    %c0_20 = arith.constant 0 : index
    %c0_21 = arith.constant 0 : index
    %31 = vector.load %arg7[%c0_20, %c0_21] : memref<8x128xf32, #tpu.memory_space<vmem>>, vector<8x128xf32>
    tpu.vector_store %arg7[%c0_20, %c0_21], %30 {strides = array<i32>} : memref<8x128xf32, #tpu.memory_space<vmem>>, vector<8x128xf32>,
    %c0_i32_22 = arith.constant 0 : i32
    %32 = arith.cmpi eq, %arg1, %c0_i32_22 : i32
    %33 = arith.extui %32 : i1 to i32
    %c0_i32_23 = arith.constant 0 : i32
    %34 = arith.cmpi ne, %33, %c0_i32_23 : i32
    scf.if %34 {
      %c0_24 = arith.constant 0 : index
      %c0_25 = arith.constant 0 : index
      %35 = vector.load %arg5[%c0_24, %c0_25] : memref<8x128xf32, #tpu.memory_space<vmem>>, vector<8x128xf32>
      %c0_26 = arith.constant 0 : index
      %c0_27 = arith.constant 0 : index
      %c0_28 = arith.constant 0 : index
      %c0_29 = arith.constant 0 : index
      %36 = vector.load %arg4[%c0_26, %c0_27, %c0_28, %c0_29] : memref<1x3x8x128xf32, #tpu.memory_space<vmem>>, vector<1x1x8x128xf32>
      %37 = vector.shape_cast %36 : vector<1x1x8x128xf32> to vector<8x128xf32>
      %38 = vector.shape_cast %35 : vector<8x128xf32> to vector<1x1x8x128xf32>
      tpu.vector_store %arg4[%c0_26, %c0_27, %c0_28, %c0_29], %38 {strides = array<i32>} : memref<1x3x8x128xf32, #tpu.memory_space<vmem>>, vector<1x1x8x128xf32>,
      %c0_30 = arith.constant 0 : index
      %c0_31 = arith.constant 0 : index
      %39 = vector.load %arg6[%c0_30, %c0_31] : memref<8x128xf32, #tpu.memory_space<vmem>>, vector<8x128xf32>
      %c0_32 = arith.constant 0 : index
      %c1 = arith.constant 1 : index
      %c0_33 = arith.constant 0 : index
      %c0_34 = arith.constant 0 : index
      %40 = vector.load %arg4[%c0_32, %c1, %c0_33, %c0_34] : memref<1x3x8x128xf32, #tpu.memory_space<vmem>>, vector<1x1x8x128xf32>
      %41 = vector.shape_cast %40 : vector<1x1x8x128xf32> to vector<8x128xf32>
      %42 = vector.shape_cast %39 : vector<8x128xf32> to vector<1x1x8x128xf32>
      tpu.vector_store %arg4[%c0_32, %c1, %c0_33, %c0_34], %42 {strides = array<i32>} : memref<1x3x8x128xf32, #tpu.memory_space<vmem>>, vector<1x1x8x128xf32>,
      %c0_35 = arith.constant 0 : index
      %c0_36 = arith.constant 0 : index
      %43 = vector.load %arg7[%c0_35, %c0_36] : memref<8x128xf32, #tpu.memory_space<vmem>>, vector<8x128xf32>
      %c0_37 = arith.constant 0 : index
      %c2 = arith.constant 2 : index
      %c0_38 = arith.constant 0 : index
      %c0_39 = arith.constant 0 : index
      %44 = vector.load %arg4[%c0_37, %c2, %c0_38, %c0_39] : memref<1x3x8x128xf32, #tpu.memory_space<vmem>>, vector<1x1x8x128xf32>
      %45 = vector.shape_cast %44 : vector<1x1x8x128xf32> to vector<8x128xf32>
      %46 = vector.shape_cast %43 : vector<8x128xf32> to vector<1x1x8x128xf32>
      tpu.vector_store %arg4[%c0_37, %c2, %c0_38, %c0_39], %46 {strides = array<i32>} : memref<1x3x8x128xf32, #tpu.memory_space<vmem>>, vector<1x1x8x128xf32>,
    } else {
    }
    return
  }
  func.func @transform_0(%arg0: i32, %arg1: i32) -> (i32, i32, i32) {
    %c0_i32 = arith.constant 0 : i32
    %c0_i32_0 = arith.constant 0 : i32
    return %arg0, %arg1, %c0_i32 : i32, i32, i32
  }
  func.func @transform_1(%arg0: i32, %arg1: i32) -> (i32, i32, i32) {
    %c0_i32 = arith.constant 0 : i32
    %c0_i32_0 = arith.constant 0 : i32
    return %arg0, %arg1, %c0_i32 : i32, i32, i32
  }
  func.func @transform_2(%arg0: i32, %arg1: i32) -> (i32, i32, i32, i32) {
    %c0_i32 = arith.constant 0 : i32
    %c0_i32_0 = arith.constant 0 : i32
    %c0_i32_1 = arith.constant 0 : i32
    %c0_i32_2 = arith.constant 0 : i32
    return %arg0, %c0_i32, %c0_i32_0, %c0_i32_1 : i32, i32, i32, i32
  }
}

</mosaic_0001>

<bundles_post_ra>
// kernel: tpu_custom_call.1
= control target key start
LH: loop header
LB: loop body
LE: loop exit
PB: predicated region body
PF: predicated region fallthrough
CT: control target
= control target key end

     0   :  { %7 = vsyncpa [#allocation6], 0  ;;  %s812_s0 = inlined_call_operand.hbm [shape: f32[2,8,128], index: 0, kind: input, shape index: {}]   ;;  %s813_s1 = inlined_call_operand.hbm [shape: f32[2,8,128], index: 1, kind: input, shape index: {}]   ;;  %s814_s2 = inlined_call_operand.hbm [shape: f32[2,3,8,128], index: 2, kind: output, shape index: {}]  }
   0x1   :  { %9 = vsyncpa [#allocation6 + $0x1], 0 }
   0x2   :  { %10 = vsyncpa [#allocation9], 0 }
   0x3   :  { %12 = vsyncpa [#allocation9 + $0x1], 0 }
   0x4   :  { %13 = vsyncpa [#allocation7], 0 }
   0x5   :  { %15 = vsyncpa [#allocation7 + $0x1], 0  ;;  %s636_s9 = smov 0   ;;  %s638_s10 = smov 0  }
   0x6   :  { %s640_s11 = smov 0   ;;  %s642_s12 = smov 0  }
   0x7   :  { %s644_s13 = smov 0   ;;  %s646_s14 = smov 0  }
   0x8 LB: > { %s383_s15 = sadd.s32 4294967295, %s614_s14   ;;  %s384_s16 = sadd.s32 4294967294, %s614_s14   ;;  %s614_s14 = sphi %s646_s14, %s21_s14   ;;  %s610_s13 = sphi %s644_s13, %s826_s13   ;;  %s606_s12 = sphi %s642_s12, %s825_s12   ;;  %s602_s11 = sphi %s640_s11, %s824_s11   ;;  %s598_s10 = sphi %s638_s10, %s823_s10   ;;  %s594_s9 = sphi %s636_s9, %s822_s9  }
   0x9   : > { %s33_s17 = sadd.s32 1, %s610_s13  ;;  %s42_s18 = sadd.s32 1, %s602_s11 }
   0xa   : > { %p35_p0 = scmp.ge.s32.totalorder %s33_s17, 2  ;;  %p49_p1 = scmp.ne.s32.totalorder %s602_s11, %s598_s10 }
   0xb   : > { %p50_p2 = scmp.eq.s32.totalorder %s614_s14, 0  ;;  %p55_p3 = scmp.ne.s32.totalorder %s598_s10, %s594_s9 }
   0xc   : > { %s828_s17 = smov (%p35_p0, %s33_s17), 0  ;;  %p56_p5 = scmp.eq.s32.totalorder %s383_s15, 0 }
   0xd   : > { %p677_p4 = por %p50_p2, %p49_p1  ;;  %s37_s20 = ssub.s32 %s610_s13, %s828_s17 }
   0xe   : > { %p107_p6 = scmp.eq.s32.totalorder %s383_s15, 1  ;;  %p40_p7 = scmp.eq.s32.totalorder %s37_s20, 0 }
   0xf   : > { %p683_p8 = por %p56_p5, %p55_p3  ;;  %p113_p10 = scmp.eq.s32.totalorder %s384_s16, 1 }
  0x10   : > { %p687_p9 = por %p107_p6, %p49_p1  ;;  %p418_p13 = scmp.lt.s32.totalorder %s614_s14, 2 }
  0x11   : > { %s692_s23 = scalar_select %p40_p7, %s602_s11, %s42_s18  }
  0x12   : > { %p694_p11 = por %p113_p10, %p55_p3  ;;  %s701_s25 = sand.u32 1, %s602_s11  }
  0x13   : > { %s387_s26 = sshll.u32 %s701_s25, 3  ;;  %s388_s27 = sshll.u32 %s610_s13, 7 }
  0x14   : > { %s143_s30 = scalar_lea.hbm %s812_s0, %s388_s27  ;;  %s137_s3 = scalar_lea.vmem [#allocation5], %s387_s26 }
  0x15   : > { %s145_s4 = sshll.u32 %s137_s3, 4  ;;  %p710_p0 = pnand %p418_p13, %p677_p4  ;;  %s146_s4 = int_to_ptr.vmem [resolvable:$true] %s145_s4 }
  0x16   : > { %p391_p1 = scmp.ge.s32.totalorder %s614_s14, 1  ;;  %p169_p2 = scmp.lt.s32.totalorder %s614_s14, 3 }
  0x17   : > { %s134_s6 = scalar_lea.sflag [#allocation6], %s701_s25  ;;  %p476_p3 = pneg %p710_p0 }
  0x18   : > { %s487_s7 = scalar_lea.vmem %s146_s4, 128  ;;  %s616_s8 = smov [#allocation5]  }
  0x19   : > { %p488_p5 = scmp.ne.s32.totalorder %s146_s4, %s487_s7  ;;  %s492_s15 = sshll.u32 %s616_s8, 4  ;;  %s493_s15 = int_to_ptr.vmem [resolvable:$false] %s492_s15 }
  0x1a   : > { %s494_s16 = scalar_lea.vmem %s493_s15, 256  ;;  %p495_p4 = scmp.lt.s32.totalorder %s146_s4, %s493_s15 }
  0x1b   : > { %p490_p6 = pnand %p488_p5, %p476_p3  ;;  %p496_p10 = scmp.lt.s32.totalorder %s494_s16, %s487_s7 }
  0x1d   : > { %p491_p7 = pneg %p490_p6  ;;  %p497_p13 = por %p496_p10, %p495_p4 }
  0x1f   : > { %p498_p12 = pnand %p497_p13, %p491_p7 }
  0x21   : > { %501 = shalt.err (!%p498_p12)
}
  0x22   : > { %410 = dma.hbm_to_vmem [thread:$0]  (!%p710_p0), %s143_s30, 128, %s146_s4, %s134_s6  }
  0x23   : > { %p728_p5 = pnand %p391_p1, %p169_p2  ;;  %s162_s28 = scalar_lea.hbm %s813_s1, %s388_s27 }
  0x24   : > { %s156_s29 = scalar_lea.vmem [#allocation8], %s387_s26  ;;  %s153_s7 = scalar_lea.sflag [#allocation9], %s701_s25 }
  0x25   : > { %s164_s3 = sshll.u32 %s156_s29, 4  ;;  %s617_s30 = smov [#allocation8]   ;;  %s165_s3 = int_to_ptr.vmem [resolvable:$true] %s164_s3 }
  0x26   : > { %s515_s8 = scalar_lea.vmem %s165_s3, 128  ;;  %s520_s4 = sshll.u32 %s617_s30, 4  ;;  %s521_s4 = int_to_ptr.vmem [resolvable:$false] %s520_s4 }
  0x27   : > { %p516_p12 = scmp.ne.s32.totalorder %s165_s3, %s515_s8  ;;  %s522_s6 = scalar_lea.vmem %s521_s4, 256 }
  0x28   : > { %p523_p1 = scmp.lt.s32.totalorder %s165_s3, %s521_s4  ;;  %p524_p2 = scmp.lt.s32.totalorder %s522_s6, %s515_s8 }
  0x29   : > { %p518_p6 = pnand %p516_p12, %p476_p3 }
  0x2a   : > { %p525_p4 = por %p524_p2, %p523_p1 }
  0x2b   : > { %p519_p7 = pneg %p518_p6 }
  0x2d   : > { %p526_p10 = pnand %p525_p4, %p519_p7 }
  0x2f   : > { %529 = shalt.err (!%p526_p10)
}
  0x30   : > { %413 = dma.hbm_to_vmem [thread:$0]  (!%p710_p0), %s162_s28, 128, %s165_s3, %s153_s7  }
  0x31   : > { %173 = sbr.rel (%p728_p5) target bundleno = 113 (0x71), region = 28  ;;  %s744_s25 = sand.u32 (!%p728_p5), 1, %s598_s10  }
  0x32   : > { %s392_s26 = sshll.u32 (!%p728_p5), %s744_s25, 3  ;;  %s176_s27 = scalar_lea.sflag (!%p728_p5), [#allocation6], %s744_s25 }
  0x33   : > { %s179_s15 = scalar_lea.vmem (!%p728_p5), [#allocation5], %s392_s26 }
  0x36   : > { %581 = dma.done.wait (%p683_p8), %s176_s27, 128  }
  0x37   : > { %583 = vsyncadd (%p683_p8), %s176_s27, 4294967168  ;;  %s185_s5 = scalar_lea.sflag [#allocation9], %s744_s25  ;;  %s188_s16 = scalar_lea.vmem [#allocation8], %s392_s26 }
  0x38   : > { %585 = dma.done.wait (%p683_p8), %s185_s5, 128  }
  0x39   : > { %587 = vsyncadd (%p683_p8), %s185_s5, 4294967168  ;;  %s399_s18 = smul.u32 24, %s744_s25  ;;  %v221_v0 = vld [vmem:[%s179_s15] sm:$0xff]  ;;  %v222_v1 = vld [vmem:[%s188_s16] sm:$0xff]  ;;  %s264_s7 = scalar_lea.sflag [#allocation7], %s744_s25 }
  0x3a   : > { %v224_v2 = vmul.f32 %v222_v1, %v221_v0  ;;  %v234_v3 = vand.u32 2147483647, %v221_v0  ;;  %v229_v4 = vadd.f32 %v222_v1, %v221_v0  ;;  %v233_v14 = vmax.f32 %v221_v0, 0.0  ;;  %s400_s21 = smul.u32 384, %s606_s12  ;;  %s618_s12 = smov [#allocation10]  }
  0x3b   : > { %s213_s19 = scalar_lea.vmem [#allocation10], %s399_s18  ;;  %s534_s30 = sshll.u32 %s618_s12, 4  ;;  %s535_s30 = int_to_ptr.vmem [resolvable:$false] %s534_s30 }
  0x3c   : > { %v235_v5 = vsub.f32 0.0, %v234_v3  ;;  %256 = vst [vmem:[%s213_s19] sm:$0xff] %v224_v2  ;;  %394 = vst [vmem:[%s213_s19 + $0x8] sm:$0xff] %v229_v4  ;;  %s277_s20 = sshll.u32 %s213_s19, 4  ;;  %s764_s3 = scalar_lea.hbm %s814_s2, %s400_s21  ;;  %s759_s20 = int_to_ptr.vmem [resolvable:$true] %s277_s20 }
  0x3d   : > { %s530_s8 = scalar_lea.vmem %s759_s20, 384  ;;  %s536_s4 = scalar_lea.vmem %s535_s30, 768 }
  0x3e   : > { %v236_v6 = vmul.f32 1.442695, %v235_v5  ;;  %p531_p8 = scmp.ne.s32.totalorder %s759_s20, %s530_s8  ;;  %p537_p13 = scmp.lt.s32.totalorder %s759_s20, %s535_s30 }
  0x3f   : > { %p538_p5 = scmp.lt.s32.totalorder %s536_s4, %s530_s8 }
  0x40   : > { %470 = vpow2.f32 %v236_v6  ;;  %p532_p0 = pnand %p531_p8, %p687_p9 }
  0x41   : > { %p539_p12 = por %p538_p5, %p537_p13 }
  0x42   : > { %p533_p3 = pneg %p532_p0 }
  0x44   : > { %p540_p6 = pnand %p539_p12, %p533_p3 }
  0x4d   : > { %v471_v7 = vpop.eup %470 }
  0x4e   : > { %v238_v8 = vadd.f32 1.0, %v471_v7  ;;  %v241_v9 = vmul.f32 -0.5, %v471_v7  ;;  %v244_v11 = vand.u32 2147483647, %v471_v7 }
  0x50   : > { %472 = vlog2.f32 %v238_v8  ;;  %v242_v10 = vadd.f32 1.0, %v241_v9  ;;  %vm245_vm0 = vcmp.lt.f32.partialorder %v244_v11, 0.0004427343 }
  0x52   : > { %v243_v12 = vmul.f32 %v471_v7, %v242_v10 }
  0x5d   : > { %v473_v13 = vpop.eup %472 }
  0x5e   : > { %v240_v15 = vmul.f32 0.6931472, %v473_v13 }
  0x60   : > { %v246_v16 = vsel %vm245_vm0, %v243_v12, %v240_v15 }
  0x61   : > { %v247_v17 = vadd.f32 %v246_v16, %v233_v14 }
  0x63   : > { %395 = vst [vmem:[%s213_s19 + $0x10] sm:$0xff] %v247_v17 }
  0x64   : > { %543 = shalt.err (!%p540_p6)
}
  0x65   : > { %s544_s6 = scalar_lea.hbm %s764_s3, 384  ;;  %s548_s15 = scalar_lea.hbm %s814_s2, 768 }
  0x66   : > { %p545_p7 = scmp.ne.s32.totalorder %s764_s3, %s544_s6  ;;  %p549_p4 = scmp.lt.s32.totalorder %s764_s3, %s814_s2 }
  0x67   : > { %p550_p10 = scmp.lt.s32.totalorder %s548_s15, %s544_s6 }
  0x68   : > { %p546_p1 = pnand %p545_p7, %p687_p9 }
  0x69   : > { %p551_p8 = por %p550_p10, %p549_p4 }
  0x6a   : > { %p547_p2 = pneg %p546_p1 }
  0x6c   : > { %p552_p0 = pnand %p551_p8, %p547_p2 }
  0x6e   : > { %555 = shalt.err (!%p552_p0)
}
  0x6f   : > { %s619_s18 = smov 128   ;;  %s620_s19 = smov 8  }
  0x70   : > { %405 = dma.vmem_to_hbm [thread:$0]  (%p687_p9), %s759_s20, 384, %s764_s3, %s264_s7, %s619_s18, %s619_s18, %s620_s19  }
  0x71 PF: > { %s292_s21 = sand.u32 1, %s594_s9   ;;  %p821_p3 = scmp.ge.s32.totalorder %s614_s14, 2 }
  0x72   : > { %s293_s28 = scalar_lea.sflag [#allocation7], %s292_s21 }
  0x73   : > { %p415_p13 = pnand %p821_p3, %p694_p11 }
  0x75   : > { %p416_p5 = pneg %p415_p13 }
  0x77   : > { %589 = dma.done.wait (%p416_p5), %s293_s28, 384  }
  0x78   : > { %591 = vsyncadd (%p416_p5), %s293_s28, 4294966912  ;;  %s21_s14 = sadd.s32 1, %s614_s14   ;;  %s822_s9 = smov %s598_s10 }
  0x79   : > { %p18_p12 = scmp.ge.s32.totalorder %s21_s14, 4   ;;  %s823_s10 = smov %s602_s11 }
  0x7a   : > { %s824_s11 = smov %s692_s23  ;;  %s825_s12 = smov %s610_s13 }
  0x7b   : > { %s826_s13 = smov %s828_s17  ;;  %20 = sbr.rel (!%p18_p12) target bundleno = 8 (0x8), region = 96 }
  0x80   :  { %298 = vsyncpa [#allocation6], 1 }
  0x81   :  { %300 = vsyncpa [#allocation6 + $0x1], 1 }
  0x82   :  { %301 = vsyncpa [#allocation9], 1 }
  0x83   :  { %303 = vsyncpa [#allocation9 + $0x1], 1 }
  0x84   :  { %304 = vsyncpa [#allocation7], 1 }
  0x85   :  { %306 = vsyncpa [#allocation7 + $0x1], 1 }

</bundles_post_ra>
